<compile_context>
chip_gen: v6e
topology: v6e:2x2x1
jax: 0.10.0
libtpu: 0.0.40
codegen_flags: <defaults>
</compile_context>

<pallas_src>
import numpy as np
import jax
import jax.numpy as jnp
from jax.experimental import pallas as pl
from jax.experimental.pallas import tpu as pltpu


def _round_up(x, m):
    return ((x + m - 1) // m) * m


def _make_fused_kernel(num_layers):
    """Kernel body: chain `num_layers` (matmul + bias) stages on one x tile."""

    def kernel(*refs):
        x_ref = refs[0]
        o_ref = refs[-1]
        h = x_ref[...]
        for i in range(num_layers):
            w_ref = refs[1 + 2 * i]   # (K_i, N_i) — already transposed on host
            b_ref = refs[2 + 2 * i]   # (1, N_i)
            h = jnp.dot(h, w_ref[...], preferred_element_type=jnp.float32) + b_ref[...]
        o_ref[...] = h.astype(o_ref.dtype)

    return kernel


def make_fully_connected_params(key, input_channels, output_channels, layers=3):
    """Deterministic init mirroring the PyTorch module's __init__ shapes."""
    # torch.linspace defaults to float32 and .long() truncates toward zero;
    # compute the schedule the same way.
    channels = np.linspace(
        np.float32(input_channels), np.float32(output_channels), layers + 1,
        dtype=np.float32).astype(np.int64)
    weights, biases = [], []
    for i in range(len(channels) - 1):
        fan_in = int(channels[i])
        fan_out = int(channels[i + 1])
        key, kw, kb = jax.random.split(key, 3)
        bound = 1.0 / np.sqrt(fan_in)
        w = jax.random.uniform(kw, (fan_out, fan_in), jnp.float32, -bound, bound)
        b = jax.random.uniform(kb, (fan_out,), jnp.float32, -bound, bound)
        weights.append(w)
        biases.append(b)
    return channels, weights, biases


def prep_kernel_params(weights, biases, compute_dtype=jnp.float32):
    """One-time layout plumbing, hoisted out of the forward pass.

    PyTorch weight (out, in) -> MXU-friendly (in, out); bias (out,) -> (1, out).
    Weights may optionally be stored in bf16 (compute_dtype); biases stay f32
    (they are added to the f32 accumulator).
    """
    wts_t = [jnp.asarray(w).T.astype(compute_dtype) for w in weights]
    bs_2d = [jnp.asarray(b).reshape(1, -1).astype(jnp.float32) for b in biases]
    return wts_t, bs_2d


def _vmem_bytes_estimate(m_blk, k_in, layer_dims, x_itemsize, out_itemsize):
    """Rough VMEM footprint with (8,128) physical padding, for budgeting."""
    rows = _round_up(max(m_blk, 8), 8)
    total = 2 * rows * _round_up(k_in, 128) * x_itemsize              # x dbl-buffer
    total += 2 * rows * _round_up(layer_dims[-1], 128) * out_itemsize  # out dbl-buffer
    prev = k_in
    for n in layer_dims:
        total += 2 * _round_up(prev, 8) * _round_up(n, 128) * 4        # resident weight
        total += 2 * 8 * _round_up(n, 128) * 4                         # resident bias
        total += rows * _round_up(n, 128) * 4                          # f32 intermediate
        prev = n
    return total


def fully_connected_forward(x, wts_t, bs_2d, *, tm=4096,
                            vmem_budget_bytes=28 * 1024 * 1024,
                            compute_dtype=None):
    """Sequential Linear stack (no activations) fused into one pallas_call.

    x:      (..., in_features)
    wts_t:  list of (K_i, N_i) pre-transposed weights
    bs_2d:  list of (1, N_i) f32 biases
    tm:     max batch tile (rows per grid step); actual tile is budgeted to VMEM.
    compute_dtype: optionally jnp.bfloat16 to halve HBM traffic (numerics drift
                   from the f32 PyTorch reference; accumulation stays f32).
    """
    orig_shape = x.shape
    out_dtype = x.dtype
    k_in = wts_t[0].shape[0]
    layer_dims = [w.shape[1] for w in wts_t]
    n_out = layer_dims[-1]
    num_layers = len(wts_t)

    h = x.reshape(-1, orig_shape[-1])
    if compute_dtype is not None and h.dtype != compute_dtype:
        h = h.astype(compute_dtype)
    m = h.shape[0]

    # --- batch tiling (no jnp.pad; ragged last block is clipped by Pallas) ---
    if m <= 8:
        m_blk = m                                   # single full-extent block
    else:
        # >= 2 grid steps (engages both v7x TCs), never more than tm rows,
        # always a multiple of 8 to satisfy the sublane constraint.
        half = _round_up(-(-m // 2), 8)
        m_blk = min(_round_up(tm, 8), half)
        # Shrink until the 128-lane-padded working set fits the VMEM budget.
        while (m_blk > 512 and
               _vmem_bytes_estimate(m_blk, k_in, layer_dims,
                                    h.dtype.itemsize,
                                    jnp.dtype(out_dtype).itemsize)
               > vmem_budget_bytes):
            m_blk = _round_up(m_blk // 2, 8)
    grid = (pl.cdiv(m, m_blk),)

    in_specs = [pl.BlockSpec((m_blk, k_in), lambda i: (i, 0))]   # streamed x tile
    flat_params = []
    for w_t, b2 in zip(wts_t, bs_2d):
        k_i, n_i = w_t.shape
        in_specs.append(pl.BlockSpec((k_i, n_i), lambda i: (0, 0)))  # resident weight
        in_specs.append(pl.BlockSpec((1, n_i), lambda i: (0, 0)))    # resident bias
        flat_params.extend((w_t, b2))

    est = _vmem_bytes_estimate(m_blk, k_in, layer_dims,
                               h.dtype.itemsize, jnp.dtype(out_dtype).itemsize)
    vmem_limit = int(min(max(2 * est, 32 * 1024 * 1024), 48 * 1024 * 1024))

    out = pl.pallas_call(
        _make_fused_kernel(num_layers),
        out_shape=jax.ShapeDtypeStruct((m, n_out), out_dtype),
        grid=grid,
        in_specs=in_specs,
        out_specs=pl.BlockSpec((m_blk, n_out), lambda i: (i, 0)),
        compiler_params=pltpu.CompilerParams(
            dimension_semantics=("parallel",),      # megacore sharding on v7x
            vmem_limit_bytes=vmem_limit),
    )(h, *flat_params)

    return out.reshape(*orig_shape[:-1], n_out)


if __name__ == "__main__":
    key = jax.random.PRNGKey(0)

    input_channels = 32
    output_channels = 8
    layers = 3

    channels, weights, biases = make_fully_connected_params(
        key, input_channels, output_channels, layers
    )
    wts_t, bs_2d = prep_kernel_params(weights, biases)

    def ref_forward(xx):
        r = xx.reshape(-1, input_channels)
        for w, b in zip(weights, biases):
            r = r @ w.T + b
        return r.reshape(*xx.shape[:-1], output_channels)

    # Case 1: batch=2, seq=8 (evenly divisible; exercises the 2-step grid path).
    kx1 = jax.random.fold_in(key, 123)
    x1 = jax.random.normal(kx1, (2, 8, input_channels), jnp.float32)
    out1 = jax.block_until_ready(fully_connected_forward(x1, wts_t, bs_2d))
    assert out1.shape == (2, 8, output_channels)
    np.testing.assert_allclose(np.asarray(out1), np.asarray(ref_forward(x1)),
                               rtol=1e-5, atol=1e-5)

    # Case 2: ragged batch (M % tile != 0; exercises clipped last block,
    # no jnp.pad round-trip).
    kx2 = jax.random.fold_in(key, 456)
    x2 = jax.random.normal(kx2, (3, 7, input_channels), jnp.float32)
    out2 = jax.block_until_ready(fully_connected_forward(x2, wts_t, bs_2d))
    assert out2.shape == (3, 7, output_channels)
    np.testing.assert_allclose(np.asarray(out2), np.asarray(ref_forward(x2)),
                               rtol=1e-5, atol=1e-5)

    print("KERNEL_OK")
</pallas_src>

<mosaic_0001>
module attributes {stable_mosaic.version = 11 : i64} {
  func.func @kernel(%arg0: i32, %arg1: memref<8x32xf32, #tpu.memory_space<vmem>>, %arg2: memref<32x24xf32, #tpu.memory_space<vmem>>, %arg3: memref<1x24xf32, #tpu.memory_space<vmem>>, %arg4: memref<24x16xf32, #tpu.memory_space<vmem>>, %arg5: memref<1x16xf32, #tpu.memory_space<vmem>>, %arg6: memref<16x8xf32, #tpu.memory_space<vmem>>, %arg7: memref<1x8xf32, #tpu.memory_space<vmem>>, %arg8: memref<8x8xf32, #tpu.memory_space<vmem>>) attributes {dimension_semantics = [#tpu.dimension_semantics<parallel>], iteration_bounds = array<i64: 2>, scalar_prefetch = 0 : i64, scratch_operands = 0 : i64, tpu.core_type = #tpu.core_type<tc>, window_params = [{transform_indices = @transform_0, window_bounds = array<i64: 8, 32>}, {pipeline_mode = #tpu.pipeline_mode<synchronous>, transform_indices = @transform_1, window_bounds = array<i64: 32, 24>}, {pipeline_mode = #tpu.pipeline_mode<synchronous>, transform_indices = @transform_2, window_bounds = array<i64: 1, 24>}, {pipeline_mode = #tpu.pipeline_mode<synchronous>, transform_indices = @transform_3, window_bounds = array<i64: 24, 16>}, {pipeline_mode = #tpu.pipeline_mode<synchronous>, transform_indices = @transform_4, window_bounds = array<i64: 1, 16>}, {pipeline_mode = #tpu.pipeline_mode<synchronous>, transform_indices = @transform_5, window_bounds = array<i64: 16, 8>}, {pipeline_mode = #tpu.pipeline_mode<synchronous>, transform_indices = @transform_6, window_bounds = array<i64: 1, 8>}, {transform_indices = @transform_7, window_bounds = array<i64: 8, 8>}]} {
    %c0 = arith.constant 0 : index
    %c0_0 = arith.constant 0 : index
    %0 = vector.load %arg1[%c0, %c0_0] : memref<8x32xf32, #tpu.memory_space<vmem>>, vector<8x32xf32>
    %c0_1 = arith.constant 0 : index
    %c0_2 = arith.constant 0 : index
    %1 = vector.load %arg2[%c0_1, %c0_2] : memref<32x24xf32, #tpu.memory_space<vmem>>, vector<32x24xf32>
    %cst = arith.constant dense<0.000000e+00> : vector<8x24xf32>
    %2 = tpu.matmul %0, %1, %cst {dimension_numbers = #tpu.dot_dimension_numbers<[1], [0], [0], [1], [0, 0, 1, 1], [], []>} : vector<8x32xf32>, vector<32x24xf32>, vector<8x24xf32> -> vector<8x24xf32>
    %c0_3 = arith.constant 0 : index
    %c0_4 = arith.constant 0 : index
    %3 = vector.load %arg3[%c0_3, %c0_4] : memref<1x24xf32, #tpu.memory_space<vmem>>, vector<1x24xf32>
    %4 = vector.broadcast %3 : vector<1x24xf32> to vector<8x24xf32>
    %5 = arith.addf %2, %4 : vector<8x24xf32>
    %c0_5 = arith.constant 0 : index
    %c0_6 = arith.constant 0 : index
    %6 = vector.load %arg4[%c0_5, %c0_6] : memref<24x16xf32, #tpu.memory_space<vmem>>, vector<24x16xf32>
    %cst_7 = arith.constant dense<0.000000e+00> : vector<8x16xf32>
    %7 = tpu.matmul %5, %6, %cst_7 {dimension_numbers = #tpu.dot_dimension_numbers<[1], [0], [0], [1], [0, 0, 1, 1], [], []>} : vector<8x24xf32>, vector<24x16xf32>, vector<8x16xf32> -> vector<8x16xf32>
    %c0_8 = arith.constant 0 : index
    %c0_9 = arith.constant 0 : index
    %8 = vector.load %arg5[%c0_8, %c0_9] : memref<1x16xf32, #tpu.memory_space<vmem>>, vector<1x16xf32>
    %9 = vector.broadcast %8 : vector<1x16xf32> to vector<8x16xf32>
    %10 = arith.addf %7, %9 : vector<8x16xf32>
    %c0_10 = arith.constant 0 : index
    %c0_11 = arith.constant 0 : index
    %11 = vector.load %arg6[%c0_10, %c0_11] : memref<16x8xf32, #tpu.memory_space<vmem>>, vector<16x8xf32>
    %cst_12 = arith.constant dense<0.000000e+00> : vector<8x8xf32>
    %12 = tpu.matmul %10, %11, %cst_12 {dimension_numbers = #tpu.dot_dimension_numbers<[1], [0], [0], [1], [0, 0, 1, 1], [], []>} : vector<8x16xf32>, vector<16x8xf32>, vector<8x8xf32> -> vector<8x8xf32>
    %c0_13 = arith.constant 0 : index
    %c0_14 = arith.constant 0 : index
    %13 = vector.load %arg7[%c0_13, %c0_14] : memref<1x8xf32, #tpu.memory_space<vmem>>, vector<1x8xf32>
    %14 = vector.broadcast %13 : vector<1x8xf32> to vector<8x8xf32>
    %15 = arith.addf %12, %14 : vector<8x8xf32>
    %c0_15 = arith.constant 0 : index
    %c0_16 = arith.constant 0 : index
    %16 = vector.load %arg8[%c0_15, %c0_16] : memref<8x8xf32, #tpu.memory_space<vmem>>, vector<8x8xf32>
    tpu.vector_store %arg8[%c0_15, %c0_16], %15 {strides = array<i32>} : memref<8x8xf32, #tpu.memory_space<vmem>>, vector<8x8xf32>,
    return
  }
  func.func @transform_0(%arg0: i32) -> (i32, i32) {
    %c0_i32 = arith.constant 0 : i32
    %c0_i32_0 = arith.constant 0 : i32
    return %arg0, %c0_i32 : i32, i32
  }
  func.func @transform_1(%arg0: i32) -> (i32, i32) {
    %c0_i32 = arith.constant 0 : i32
    %c0_i32_0 = arith.constant 0 : i32
    %c0_i32_1 = arith.constant 0 : i32
    return %c0_i32, %c0_i32_0 : i32, i32
  }
  func.func @transform_2(%arg0: i32) -> (i32, i32) {
    %c0_i32 = arith.constant 0 : i32
    %c0_i32_0 = arith.constant 0 : i32
    %c0_i32_1 = arith.constant 0 : i32
    return %c0_i32, %c0_i32_0 : i32, i32
  }
  func.func @transform_3(%arg0: i32) -> (i32, i32) {
    %c0_i32 = arith.constant 0 : i32
    %c0_i32_0 = arith.constant 0 : i32
    %c0_i32_1 = arith.constant 0 : i32
    return %c0_i32, %c0_i32_0 : i32, i32
  }
  func.func @transform_4(%arg0: i32) -> (i32, i32) {
    %c0_i32 = arith.constant 0 : i32
    %c0_i32_0 = arith.constant 0 : i32
    %c0_i32_1 = arith.constant 0 : i32
    return %c0_i32, %c0_i32_0 : i32, i32
  }
  func.func @transform_5(%arg0: i32) -> (i32, i32) {
    %c0_i32 = arith.constant 0 : i32
    %c0_i32_0 = arith.constant 0 : i32
    %c0_i32_1 = arith.constant 0 : i32
    return %c0_i32, %c0_i32_0 : i32, i32
  }
  func.func @transform_6(%arg0: i32) -> (i32, i32) {
    %c0_i32 = arith.constant 0 : i32
    %c0_i32_0 = arith.constant 0 : i32
    %c0_i32_1 = arith.constant 0 : i32
    return %c0_i32, %c0_i32_0 : i32, i32
  }
  func.func @transform_7(%arg0: i32) -> (i32, i32) {
    %c0_i32 = arith.constant 0 : i32
    %c0_i32_0 = arith.constant 0 : i32
    return %arg0, %c0_i32 : i32, i32
  }
}

</mosaic_0001>

<bundles_post_ra>
// kernel: tpu_custom_call.1
= control target key start
LH: loop header
LB: loop body
LE: loop exit
PB: predicated region body
PF: predicated region fallthrough
CT: control target
= control target key end

     0   :  { %s696_s24 = smov 0   ;;  %s759_s0 = inlined_call_operand.vmem [shape: f32[16,32], index: 0, kind: input, shape index: {}]   ;;  %s760_s1 = inlined_call_operand.vmem [shape: f32[32,24], index: 1, kind: input, shape index: {}]   ;;  %s761_s2 = inlined_call_operand.vmem [shape: f32[1,24], index: 2, kind: input, shape index: {}]   ;;  %s762_s3 = inlined_call_operand.vmem [shape: f32[24,16], index: 3, kind: input, shape index: {}]   ;;  %s763_s4 = inlined_call_operand.vmem [shape: f32[1,16], index: 4, kind: input, shape index: {}]   ;;  %s764_s5 = inlined_call_operand.vmem [shape: f32[16,8], index: 5, kind: input, shape index: {}]   ;;  %s765_s6 = inlined_call_operand.vmem [shape: f32[1,8], index: 6, kind: input, shape index: {}]   ;;  %s766_s7 = inlined_call_operand.vmem [shape: f32[16,8], index: 7, kind: output, shape index: {}]  }
   0x1 LB: > { %s582_s25 = sadd.s32 4294967295, %s652_s24   ;;  %p586_p0 = scmp.ge.s32.totalorder %s652_s24, 1  ;;  %s652_s24 = sphi %s696_s24, %s17_s24  }
   0x2   : > { %p236_p1 = scmp.lt.s32.totalorder %s652_s24, 3 }
   0x4   : > { %p237_p2 = pnand %p586_p0, %p236_p1 }
   0x5   : > { %p266_p3 = scmp.lt.s32.totalorder (!%p237_p2), %s582_s25, 1 }
   0x6   : > { %240 = sbr.rel (%p237_p2) target bundleno = 606 (0x25e), region = 48 }
   0xb   : > { %v278_v0 = vld [vmem:[%s760_s1 + $0x18] sm:$0xff]  ;;  %v654_v1 = vmov 0.0   ;;  %v277_v2 = vld [vmem:[%s760_s1 + $0x10] sm:$0xff]  ;;  %vm655_vm0 = vmmov 0   ;;  %s768_s25 = smov (!%p266_p3, %s582_s25), 1  ;;  %v276_v4 = vld [vmem:[%s760_s1 + $0x8] sm:$0xff] }
   0xc   : > { %609 = vmatprep.subr.mxu0 %v654_v1  ;;  %617 = vmatprep.mubr.msk.f32.mxu0 %vm655_vm0, %v654_v1  ;;  %v362_v3 = vld [vmem:[%s762_s3 + $0x10] sm:$0xff]  ;;  %s587_s11 = sshll.u32 %s768_s25, 3  ;;  %v275_v5 = vld [vmem:[%s760_s1] sm:$0xff]  ;;  %vm286_vm1 = vcmask 261120   ;;  %v361_v7 = vld [vmem:[%s762_s3 + $0x8] sm:$0xff]  ;;  %vm370_vm2 = vcmask 195584  }
   0xd   : > { %610 = vmatpush3.msra.mxu0 %v278_v0  ;;  %620 = vmatprep.subr.mxu1 %v654_v1  ;;  %s269_s16 = scalar_lea.vmem %s759_s0, %s587_s11  ;;  %v360_v8 = vld [vmem:[%s762_s3] sm:$0xff]  ;;  %v445_v12 = vld [vmem:[%s764_s5 + $0x8] sm:$0xff]  ;;  %vm453_vm3 = vcmask 130048   ;;  %s273_s13 = scalar_lea.vmem %s766_s7, %s587_s11  ;;  %vm527_vm4 = vcmask 64512  }
   0xe   : > { %611 = vmatprep.subr.mxu0 %v654_v1  ;;  %621 = vmatpush3.msra.mxu1 %v362_v3  ;;  %v274_v6 = vld [vmem:[%s269_s16] sm:$0xff] }
   0xf   : > { %612 = vmatpush3.msra.mxu0 %v277_v2  ;;  %622 = vmatprep.subr.mxu1 %v654_v1  ;;  %v589_v9 = vld [vmem:[%s761_s2] ss:$0 sm:$0xff] }
  0x10   : > { %613 = vmatprep.subr.mxu0 %v654_v1  ;;  %626 = vmatprep.mubr.msk.f32.mxu1 %vm655_vm0, %v654_v1  ;;  %v444_v14 = vld [vmem:[%s764_s5] sm:$0xff] }
  0x11   : > { %614 = vmatpush3.msra.mxu0 %v276_v4  ;;  %623 = vmatpush3.msra.mxu1 %v361_v7  ;;  %v591_v15 = vld [vmem:[%s763_s4] ss:$0 sm:$0xff] }
  0x12   : > { %615 = vmatprep.subr.mxu0 %v654_v1  ;;  %624 = vmatprep.subr.mxu1 %v654_v1  ;;  %v593_v19 = vld [vmem:[%s765_s6] ss:$0 sm:$0xff] }
  0x13   : > { %616 = vmatpush3.msra.mxu0 %v275_v5  ;;  %625 = vmatpush3.msra.mxu1 %v360_v8 }
  0x14   : > { %618 = vmatmul.mubr.msk.f32.vlgmr.msra.gmra.mxu0 %vm286_vm1, %v274_v6  ;;  %629 = vmatprep.subr.mxu1 %v654_v1 }
  0xd4   : > { %v356_v10 = vpop.f32.mrf.mxu0 }
  0xd5   : > { %v357_v11 = vadd.f32 %v589_v9, %v356_v10 }
  0xd6   : > { %v619_v13 = vpop.f32.mrf.mxu0 }
  0xd7   : > { %627 = vmatmul.mubr.msk.f32.vlgmr.msra.gmra.mxu1 %vm370_vm2, %v357_v11 }
  0xd8   : > { %630 = vmatpush3.msra.mxu1 %v445_v12  ;;  %633 = vmatprep.mubr.msk.f32.mxu1 %vm655_vm0, %v654_v1 }
  0xd9   : > { %631 = vmatprep.subr.mxu1 %v654_v1 }
  0xda   : > { %632 = vmatpush3.msra.mxu1 %v444_v14 }
 0x197   : > { %v440_v16 = vpop.f32.mrf.mxu1 }
 0x198   : > { %v441_v17 = vadd.f32 %v591_v15, %v440_v16 }
 0x199   : > { %v628_v18 = vpop.f32.mrf.mxu1 }
 0x19a   : > { %634 = vmatmul.mubr.msk.f32.vlgmr.msra.gmra.mxu1 %vm453_vm3, %v441_v17 }
 0x25a   : > { %v523_v20 = vpop.f32.mrf.mxu1 }
 0x25b   : > { %v524_v21 = vadd.f32 %v593_v19, %v523_v20 }
 0x25c   : > { %v635_v22 = vpop.f32.mrf.mxu1 }
 0x25d   : > { %528 = vst.msk [vmem:[%s273_s13] sm:$0xff] %vm527_vm4, %v524_v21 }
 0x25e PF: > { %s17_s24 = sadd.s32 1, %s652_s24  }
 0x25f   : > { %p14_p4 = scmp.ge.s32.totalorder %s17_s24, 4  }
 0x261   :  { %16 = sbr.rel (!%p14_p4) target bundleno = 1 (0x1), region = 78 }

</bundles_post_ra>
